<compile_context>
chip_gen: v5e
topology: v5e:2x2
jax: 0.10.0
libtpu: 0.0.40
codegen_flags: <defaults>
</compile_context>

<pallas_src>
import functools

import jax
import jax.numpy as jnp
from jax.experimental import pallas as pl
from jax.experimental.pallas import tpu as pltpu


def _residual_norm_kernel(x_ref, t_ref, alpha_ref, bias_ref, o_ref, *, eps):
    # x_ref, o_ref: (rows, d) in x's dtype; t_ref: (rows, d) in sublayer dtype;
    # alpha_ref, bias_ref: (1, d) f32.
    t = t_ref[...].astype(jnp.float32)
    d = t.shape[-1]

    mean = jnp.sum(t, axis=-1, keepdims=True) * (1.0 / d)
    centered = t - mean
    # torch.std default is unbiased (Bessel, /(d-1)). d == 1 -> NaN, matching
    # torch's behavior for this module.
    var = jnp.sum(centered * centered, axis=-1, keepdims=True) * (1.0 / (d - 1))
    std = jnp.sqrt(var)

    # Per-row reciprocal on a (rows, 1) vector (EUP slot), then one vmul over
    # the (rows, d) tile instead of a full-tile divide.
    inv = pl.reciprocal(std + eps, approx=False)

    y = centered * inv
    y = y * alpha_ref[...] + bias_ref[...]
    # Residual add and store in the output dtype: x is never upcast to f32,
    # saving two full-tile VPU passes (matters on v7x near the HBM/VALU
    # crossover; neutral elsewhere).
    o_ref[...] = x_ref[...] + y.astype(o_ref.dtype)


def _vmem_capacity_bytes():
    try:
        return int(pltpu.get_tpu_info().vmem_capacity_bytes)
    except Exception:
        return 64 * 2**20  # conservative fallback (v7x-sized)


def _choose_block_rows(n, d, dtype, vmem_cap):
    """Row tile: generation-aware buffer size, sublane aligned, >=2 grid steps."""
    itemsize = jnp.dtype(dtype).itemsize
    sub = 8 if itemsize >= 4 else (16 if itemsize == 2 else 32)
    if vmem_cap >= 100 * 2**20:
        # v5e / v6e: 128 MiB physical VMEM -> big tiles push toward roofline.
        target_bytes, row_cap = 6 * 2**20, 2048
    else:
        # v7x: 64 MiB physical VMEM -> keep buffers modest.
        target_bytes, row_cap = 3 * 2**20, 1024

    rows = max(sub, min(row_cap, target_bytes // max(1, d * itemsize)))
    rows = max((rows // sub) * sub, sub)

    # Guarantee >= 2 grid steps so the single "parallel" axis shards across
    # both v7x TensorCores (single-step grids run on one TC only).
    if n >= 2 * sub:
        rows = min(rows, max(((n // 2) // sub) * sub, sub))

    if rows >= n:
        return n  # full-extent block (always a legal block shape)
    return rows


def residual_norm_pallas(x2d, t2d, alpha, bias, *, eps=1e-6, block_rows=None):
    """out = x2d + LayerNorm(t2d) * alpha + bias, row-wise over the last dim.

    x2d: (N, D); t2d: (N, D) in its own (sublayer) dtype; alpha, bias: (D,).
    Returns (N, D) in x2d's dtype. NOTE: for best store-path perf D should be
    a multiple of 128 (typical d_model); other D still works (full-extent
    lane block, masked partial stores).
    """
    n, d = x2d.shape
    assert t2d.shape == (n, d)

    vmem_cap = _vmem_capacity_bytes()
    if block_rows is None:
        block_rows = _choose_block_rows(n, d, x2d.dtype, vmem_cap)
    block_rows = min(block_rows, n)
    grid = (pl.cdiv(n, block_rows),)

    alpha2d = alpha.reshape(1, d).astype(jnp.float32)
    bias2d = bias.reshape(1, d).astype(jnp.float32)

    # VMEM budget: 2 double-buffered streams in x's dtype (x, out) + 1 in t's
    # dtype, plus ~3 f32 full-tile temporaries for the norm math.
    x_item = jnp.dtype(x2d.dtype).itemsize
    t_item = jnp.dtype(t2d.dtype).itemsize
    stream_bytes = block_rows * d * (2 * x_item + t_item)
    need = 2 * stream_bytes + 3 * block_rows * d * 4 + 4 * d * 4
    cap = 96 * 2**20 if vmem_cap >= 100 * 2**20 else 48 * 2**20
    vmem_limit = int(min(cap, max(32 * 2**20, need)))

    kernel = functools.partial(_residual_norm_kernel, eps=eps)

    return pl.pallas_call(
        kernel,
        out_shape=jax.ShapeDtypeStruct((n, d), x2d.dtype),
        grid_spec=pl.GridSpec(
            grid=grid,
            in_specs=[
                pl.BlockSpec((block_rows, d), lambda i: (i, 0)),
                pl.BlockSpec((block_rows, d), lambda i: (i, 0)),
                pl.BlockSpec((1, d), lambda i: (0, 0)),
                pl.BlockSpec((1, d), lambda i: (0, 0)),
            ],
            out_specs=pl.BlockSpec((block_rows, d), lambda i: (i, 0)),
        ),
        # Output has x's shape/dtype and x is fully consumed -> alias in-place.
        input_output_aliases={0: 0},
        compiler_params=pltpu.CompilerParams(
            dimension_semantics=("parallel",),
            vmem_limit_bytes=vmem_limit,
        ),
    )(x2d, t2d, alpha2d, bias2d)


class ResidualConnectionPallas:
    """JAX/Pallas port of the torch ResidualConnection.

    forward(x, prev_layer):
        temp = prev_layer(x); temp = LayerNorm(temp); x = x + temp; dropout(x)
    Dropout is identity (eval-mode forward).
    """

    def __init__(self, d_model, dropout=0.1):
        self.d_model = d_model
        self.eps = 1e-6
        self.dropout_p = dropout  # identity in this forward pass (eval mode)
        # nn.Parameter(torch.ones/zeros) equivalents.
        self.alpha = jnp.ones((d_model,), dtype=jnp.float32)
        self.bias = jnp.zeros((d_model,), dtype=jnp.float32)

    def __call__(self, x, prev_layer):
        temp = prev_layer(x)  # arbitrary sublayer: plain JAX outside the kernel
        shape = x.shape
        d = shape[-1]
        x2d = x.reshape(-1, d)
        # Pass temp in its native dtype: no host-side convert (extra HBM pass),
        # the kernel upcasts to f32 for the norm math.
        t2d = temp.reshape(-1, d)
        y2d = residual_norm_pallas(x2d, t2d, self.alpha, self.bias, eps=self.eps)
        return y2d.reshape(shape)


def _reference(x, prev_layer, alpha, bias, eps=1e-6):
    t = prev_layer(x)
    mean = jnp.mean(t, axis=-1, keepdims=True)
    var = jnp.sum((t - mean) ** 2, axis=-1, keepdims=True) / (t.shape[-1] - 1)
    std = jnp.sqrt(var)
    y = (t - mean) / (std + eps) * alpha + bias
    return x + y  # dropout is identity in eval mode


if __name__ == "__main__":
    key = jax.random.PRNGKey(0)
    batch, seq, d_model = 2, 8, 128  # lane-dense D (multiple of 128)

    x = jax.random.normal(key, (batch, seq, d_model), dtype=jnp.float32)

    # Deterministic stand-in for the externally-supplied prev_layer sublayer.
    def prev_layer(v):
        return jnp.tanh(v) * 1.5 + 0.25

    block = ResidualConnectionPallas(d_model=d_model, dropout=0.1)
    fwd = jax.jit(lambda v: block(v, prev_layer))
    out = jax.block_until_ready(fwd(x))

    ref = _reference(x, prev_layer, block.alpha, block.bias, eps=block.eps)
    assert out.shape == x.shape and out.dtype == x.dtype
    assert jnp.allclose(out, ref, atol=1e-5, rtol=1e-5)

    print("KERNEL_OK")
</pallas_src>

<mosaic_0001>
module attributes {stable_mosaic.version = 11 : i64} {
  func.func @_residual_norm_kernel(%arg0: i32, %arg1: memref<8x128xf32, #tpu.memory_space<vmem>>, %arg2: memref<8x128xf32, #tpu.memory_space<vmem>>, %arg3: memref<1x128xf32, #tpu.memory_space<vmem>>, %arg4: memref<1x128xf32, #tpu.memory_space<vmem>>, %arg5: memref<8x128xf32, #tpu.memory_space<vmem>>) attributes {dimension_semantics = [#tpu.dimension_semantics<parallel>], iteration_bounds = array<i64: 2>, scalar_prefetch = 0 : i64, scratch_operands = 0 : i64, tpu.core_type = #tpu.core_type<tc>, window_params = [{transform_indices = @transform_0, window_bounds = array<i64: 8, 128>}, {transform_indices = @transform_1, window_bounds = array<i64: 8, 128>}, {pipeline_mode = #tpu.pipeline_mode<synchronous>, transform_indices = @transform_2, window_bounds = array<i64: 1, 128>}, {pipeline_mode = #tpu.pipeline_mode<synchronous>, transform_indices = @transform_3, window_bounds = array<i64: 1, 128>}, {transform_indices = @transform_4, window_bounds = array<i64: 8, 128>}]} {
    %c0 = arith.constant 0 : index
    %c0_0 = arith.constant 0 : index
    %0 = vector.load %arg2[%c0, %c0_0] : memref<8x128xf32, #tpu.memory_space<vmem>>, vector<8x128xf32>
    %cst = arith.constant dense<0.000000e+00> : vector<8xf32>
    %1 = vector.multi_reduction <add>, %0, %cst [1] : vector<8x128xf32> to vector<8xf32>
    %2 = vector.shape_cast %1 : vector<8xf32> to vector<8x1xf32>
    %cst_1 = arith.constant 7.812500e-03 : f32
    %3 = vector.broadcast %cst_1 : f32 to vector<8x1xf32>
    %4 = arith.mulf %2, %3 : vector<8x1xf32>
    %5 = vector.broadcast %4 : vector<8x1xf32> to vector<8x128xf32>
    %6 = arith.subf %0, %5 : vector<8x128xf32>
    %7 = arith.mulf %6, %6 : vector<8x128xf32>
    %cst_2 = arith.constant dense<0.000000e+00> : vector<8xf32>
    %8 = vector.multi_reduction <add>, %7, %cst_2 [1] : vector<8x128xf32> to vector<8xf32>
    %9 = vector.shape_cast %8 : vector<8xf32> to vector<8x1xf32>
    %cst_3 = arith.constant 0.00787401571 : f32
    %10 = vector.broadcast %cst_3 : f32 to vector<8x1xf32>
    %11 = arith.mulf %9, %10 : vector<8x1xf32>
    %12 = math.sqrt %11 : vector<8x1xf32>
    %cst_4 = arith.constant 9.99999997E-7 : f32
    %13 = vector.broadcast %cst_4 : f32 to vector<8x1xf32>
    %14 = arith.addf %12, %13 : vector<8x1xf32>
    %15 = tpu.reciprocal %14 : vector<8x1xf32> -> vector<8x1xf32>
    %16 = vector.broadcast %15 : vector<8x1xf32> to vector<8x128xf32>
    %17 = arith.mulf %6, %16 : vector<8x128xf32>
    %c0_5 = arith.constant 0 : index
    %c0_6 = arith.constant 0 : index
    %18 = vector.load %arg3[%c0_5, %c0_6] : memref<1x128xf32, #tpu.memory_space<vmem>>, vector<1x128xf32>
    %19 = vector.broadcast %18 : vector<1x128xf32> to vector<8x128xf32>
    %20 = arith.mulf %17, %19 : vector<8x128xf32>
    %c0_7 = arith.constant 0 : index
    %c0_8 = arith.constant 0 : index
    %21 = vector.load %arg4[%c0_7, %c0_8] : memref<1x128xf32, #tpu.memory_space<vmem>>, vector<1x128xf32>
    %22 = vector.broadcast %21 : vector<1x128xf32> to vector<8x128xf32>
    %23 = arith.addf %20, %22 : vector<8x128xf32>
    %c0_9 = arith.constant 0 : index
    %c0_10 = arith.constant 0 : index
    %24 = vector.load %arg1[%c0_9, %c0_10] : memref<8x128xf32, #tpu.memory_space<vmem>>, vector<8x128xf32>
    %25 = arith.addf %24, %23 : vector<8x128xf32>
    %c0_11 = arith.constant 0 : index
    %c0_12 = arith.constant 0 : index
    %26 = vector.load %arg5[%c0_11, %c0_12] : memref<8x128xf32, #tpu.memory_space<vmem>>, vector<8x128xf32>
    tpu.vector_store %arg5[%c0_11, %c0_12], %25 {strides = array<i32>} : memref<8x128xf32, #tpu.memory_space<vmem>>, vector<8x128xf32>,
    return
  }
  func.func @transform_0(%arg0: i32) -> (i32, i32) {
    %c0_i32 = arith.constant 0 : i32
    %c0_i32_0 = arith.constant 0 : i32
    return %arg0, %c0_i32 : i32, i32
  }
  func.func @transform_1(%arg0: i32) -> (i32, i32) {
    %c0_i32 = arith.constant 0 : i32
    %c0_i32_0 = arith.constant 0 : i32
    return %arg0, %c0_i32 : i32, i32
  }
  func.func @transform_2(%arg0: i32) -> (i32, i32) {
    %c0_i32 = arith.constant 0 : i32
    %c0_i32_0 = arith.constant 0 : i32
    %c0_i32_1 = arith.constant 0 : i32
    return %c0_i32, %c0_i32_0 : i32, i32
  }
  func.func @transform_3(%arg0: i32) -> (i32, i32) {
    %c0_i32 = arith.constant 0 : i32
    %c0_i32_0 = arith.constant 0 : i32
    %c0_i32_1 = arith.constant 0 : i32
    return %c0_i32, %c0_i32_0 : i32, i32
  }
  func.func @transform_4(%arg0: i32) -> (i32, i32) {
    %c0_i32 = arith.constant 0 : i32
    %c0_i32_0 = arith.constant 0 : i32
    return %arg0, %c0_i32 : i32, i32
  }
}

</mosaic_0001>

<bundles_post_ra>
// kernel: _lambda_.1
= control target key start
LH: loop header
LB: loop body
LE: loop exit
PB: predicated region body
PF: predicated region fallthrough
CT: control target
= control target key end

     0   :  { %s382_s15 = smov 0   ;;  %s413_s0 = inlined_call_operand.vmem [shape: f32[16,128], index: 0, kind: input, shape index: {}, may-alias: {0,4}]   ;;  %s414_s1 = inlined_call_operand.vmem [shape: f32[16,128], index: 1, kind: input, shape index: {}]   ;;  %s415_s2 = inlined_call_operand.vmem [shape: f32[1,128], index: 2, kind: input, shape index: {}]   ;;  %s416_s3 = inlined_call_operand.vmem [shape: f32[1,128], index: 3, kind: input, shape index: {}]   ;;  %s417_s4 = inlined_call_operand.vmem [shape: f32[16,128], index: 4, kind: output, shape index: {}, may-alias: {0,4}]  }
   0x1 LB: > { %s325_s16 = sadd.s32 4294967295, %s355_s15   ;;  %p329_p0 = scmp.ge.s32.totalorder %s355_s15, 1  ;;  %s355_s15 = sphi %s382_s15, %s14_s15  }
   0x2   : > { %p170_p1 = scmp.lt.s32.totalorder %s355_s15, 3 }
   0x4   : > { %p171_p2 = pnand %p329_p0, %p170_p1 }
   0x5   : > { %p198_p3 = scmp.lt.s32.totalorder (!%p171_p2), %s325_s16, 1 }
   0x6   : > { %174 = sbr.rel (%p171_p2) target bundleno = 304 (0x130), region = 36 }
   0xb   : > { %s419_s16 = smov (!%p198_p3, %s325_s16), 1  ;;  %v343_v26 = vld [vmem:[%s415_s2] ss:$0 sm:$0xff] }
   0xc   : > { %s390_s17 = sshll.u32 %s419_s16, 3  ;;  %v344_v29 = vld [vmem:[%s416_s3] ss:$0 sm:$0xff] }
   0xd   : > { %s205_s20 = scalar_lea.vmem %s414_s1, %s390_s17  ;;  %s201_s25 = scalar_lea.vmem %s413_s0, %s390_s17 }
   0xe   : > { %v210_v0 = vld [vmem:[%s205_s20] sm:$0xff]  ;;  %s209_s30 = scalar_lea.vmem %s417_s4, %s390_s17 }
   0xf   : > { %211 = vadd.xlane.f32.xlu0 %v210_v0  ;;  %v257_v32 = vld [vmem:[%s201_s25] sm:$0xff] }
  0x82   : > { %v212_v1 = vpop.xlane.xlu0 %211 }
  0x83   : > { %v213_v2 = vmul.f32 0.0078125, %v212_v1 }
  0x85   : > { %v214_v3 = vsub.f32 %v210_v0, %v213_v2 }
  0x87   : > { %v215_v4 = vmul.f32 %v214_v3, %v214_v3 }
  0x89   : > { %216 = vadd.xlane.f32.xlu0 %v215_v4 }
  0xfc   : > { %v217_v5 = vpop.xlane.xlu0 %216 }
  0xfd   : > { %v218_v6 = vmul.f32 0.007874016, %v217_v5 }
  0xff   : > { %345 = vrsqrt.f32 %v218_v6  ;;  %vm226_vm0 = vcmp.eq.f32.partialorder %v218_v6, inf  ;;  %v229_v14 = vand.u32 2147483648, %v218_v6  ;;  %vm228_vm1 = vcmp.eq.f32.partialorder %v218_v6, 0.0 }
 0x105   : > { %v346_v7 = vpop.eup %345 }
 0x106   : > { %v220_v8 = vmul.f32 %v346_v7, %v218_v6 }
 0x108   : > { %v221_v9 = vmul.f32 %v346_v7, %v220_v8 }
 0x10a   : > { %v222_v10 = vmul.f32 0.5, %v221_v9 }
 0x10c   : > { %v223_v11 = vsub.f32 1.5, %v222_v10 }
 0x10e   : > { %v224_v12 = vmul.f32 %v346_v7, %v223_v11 }
 0x110   : > { %v225_v13 = vmul.f32 %v224_v12, %v218_v6 }
 0x112   : > { %v227_v15 = vsel %vm226_vm0, %v218_v6, %v225_v13 }
 0x113   : > { %v230_v16 = vsel %vm228_vm1, %v229_v14, %v227_v15 }
 0x114   : > { %v231_v17 = vadd.f32 1e-06, %v230_v16 }
 0x116   : > { %347 = vrcp.f32 %v231_v17  ;;  %v243_v21 = vand.u32 2147483648, %v231_v17  ;;  %v241_v23 = vand.u32 2147483647, %v231_v17  ;;  %vm237_vm3 = vweird.f32 %v231_v17 }
 0x118   : > { %v244_v25 = vor.u32 1.1754944e-38, %v243_v21  ;;  %vm242_vm5 = vcmp.eq.f32.partialorder %v241_v23, 8.507059e+37 }
 0x11c   : > { %v348_v18 = vpop.eup %347 }
 0x11d   : > { %v233_v19 = vmul.f32 %v348_v18, %v231_v17  ;;  %vm238_vm2 = vweird.f32 %v348_v18 }
 0x11e   : > { %vm239_vm4 = vmor %vm237_vm3, %vm238_vm2 }
 0x11f   : > { %v234_v20 = vsub.f32 1.0, %v233_v19 }
 0x121   : > { %v235_v22 = vmul.f32 %v348_v18, %v234_v20 }
 0x123   : > { %v236_v24 = vadd.f32 %v348_v18, %v235_v22 }
 0x125   : > { %v240_v27 = vsel %vm239_vm4, %v348_v18, %v236_v24 }
 0x126   : > { %v245_v28 = vsel %vm242_vm5, %v244_v25, %v240_v27 }
 0x127   : > { %v246_v30 = vmul.f32 %v245_v28, %v214_v3 }
 0x129   : > { %v251_v31 = vmul.f32 %v343_v26, %v246_v30 }
 0x12b   : > { %v256_v33 = vadd.f32 %v344_v29, %v251_v31 }
 0x12d   : > { %v258_v34 = vadd.f32 %v257_v32, %v256_v33 }
 0x12f   : > { %259 = vst [vmem:[%s209_s30] sm:$0xff] %v258_v34 }
 0x130 PF: > { %s14_s15 = sadd.s32 1, %s355_s15  }
 0x131   : > { %p11_p4 = scmp.ge.s32.totalorder %s14_s15, 4  }
 0x133   :  { %13 = sbr.rel (!%p11_p4) target bundleno = 1 (0x1), region = 69 }

</bundles_post_ra>
